<compile_context>
chip_gen: v7x
topology: tpu7x:2x2x1
jax: 0.10.0
libtpu: 0.0.40
codegen_flags: <defaults>
</compile_context>

<pallas_src>
import math

import numpy as np
import jax
import jax.numpy as jnp
from jax.experimental import pallas as pl
from jax.experimental.pallas import tpu as pltpu

POOL_SIZES = (1, 2, 3, 6)


def _offsets(sizes):
    off, out = 0, []
    for s in sizes:
        out.append(off)
        off += s
    return tuple(out)


SK = sum(POOL_SIZES)                       # 12: concatenated 1-D pool-bin axis
SKK = sum(k * k for k in POOL_SIZES)       # 50: concatenated flattened k*k axis
K_OFF = _offsets(POOL_SIZES)               # (0, 1, 3, 6)
C_OFF = _offsets(tuple(k * k for k in POOL_SIZES))   # (0, 1, 5, 14)


# --------------------------------------------------------------------------
# Fused kernel.
#   x_ref    : (1, Ht, W)       one batch element, one H tile
#   ph_ref   : (Ht, SK)         separable H-pool weights (all 4 pool sizes)
#   pwB_ref  : (W, SKK)         separable W-pool weights, expanded per flat (i,j) bin
#   selT_ref : (SK, SKK)        static 0/1 selector that flattens each (k,k) block
#   weff_ref : (4*Cout, 1)      folded conv1x1 * depthwise1x1 * pointwise1x1 weights
#   gamma/beta_ref : (Cout, SKK)  LayerNorm affine (flattened, concatenated branches)
#   rz_ref   : (SKK, He*We)     bilinear-resize matrices (align_corners=False)
#   o_ref    : (1, 4*Cout, He*We)
#   acc_ref  : (SK, W) f32      VMEM scratch: partial H-reduction accumulator
# --------------------------------------------------------------------------
def _pyramid_kernel(x_ref, ph_ref, pwB_ref, selT_ref, weff_ref,
                    gamma_ref, beta_ref, rz_ref, o_ref, acc_ref):
    t = pl.program_id(1)

    @pl.when(t == 0)
    def _init():
        acc_ref[...] = jnp.zeros_like(acc_ref)

    # Partial H reduction for all 4 pool sizes at once (separable pooling):
    #   acc[i, w] += sum_h Ph[h, i] * x[h, w]     (A^T B form, 2-D MXU matmul)
    acc_ref[...] += jax.lax.dot_general(
        ph_ref[...], x_ref[0],
        dimension_numbers=(((0,), (0,)), ((), ())),
        preferred_element_type=jnp.float32)

    @pl.when(t == pl.num_programs(1) - 1)
    def _finalize():
        t1 = acc_ref[...]                                        # (SK, W) f32
        # W reduction for every branch / flat bin in one matmul: (SK,W)@(W,SKK)
        g = jnp.dot(t1, pwB_ref[...], preferred_element_type=jnp.float32)
        # Flatten each branch's (k,k) pooled block to a (1,k*k) row via a masked
        # sublane reduction (avoids any reshape of trailing dims in-kernel).
        pooled = jnp.sum(selT_ref[...] * g, axis=0, keepdims=True)   # (1, SKK)

        weff = weff_ref[...]                                     # (4*Cout, 1)
        cout = weff_ref.shape[0] // len(POOL_SIZES)
        for b, k in enumerate(POOL_SIZES):
            kk = k * k
            c0, c1 = C_OFF[b], C_OFF[b] + kk
            p_b = pooled[:, c0:c1]                               # (1, kk)  pooled input
            w_b = weff[b * cout:(b + 1) * cout, :]               # (Cout, 1) folded convs
            q = w_b * p_b                                        # (Cout, kk)
            # LayerNorm over (Cout, k, k) per sample: biased variance, eps=1e-5.
            mean = jnp.mean(q, keepdims=True)
            var = jnp.mean(jnp.square(q - mean), keepdims=True)
            qn = (q - mean) * jax.lax.rsqrt(var + 1e-5)
            qn = qn * gamma_ref[:, c0:c1] + beta_ref[:, c0:c1]
            r = jnp.maximum(qn, 0.0)                             # ReLU
            # Bilinear resize (align_corners=False) as a matmul with a static matrix.
            feat = jnp.dot(r, rz_ref[c0:c1, :],
                           preferred_element_type=jnp.float32)   # (Cout, He*We)
            o_ref[0, b * cout:(b + 1) * cout, :] = feat


# --------------------------------------------------------------------------
# Static helper matrices (exact PyTorch semantics), plain numpy glue.
# --------------------------------------------------------------------------
def _adaptive_pool_matrix(out_size, in_size):
    # AdaptiveAvgPool bins: start = floor(i*H/k), end = ceil((i+1)*H/k)
    P = np.zeros((out_size, in_size), dtype=np.float32)
    for i in range(out_size):
        s = (i * in_size) // out_size
        e = -((-(i + 1) * in_size) // out_size)
        P[i, s:e] = 1.0 / (e - s)
    return P


def _bilinear_matrix(out_size, in_size):
    # F.interpolate(mode='bilinear', align_corners=False), 1-D separable weights
    M = np.zeros((out_size, in_size), dtype=np.float32)
    scale = in_size / out_size
    for a in range(out_size):
        src = max((a + 0.5) * scale - 0.5, 0.0)
        i0 = min(int(np.floor(src)), in_size - 1)
        i1 = min(i0 + 1, in_size - 1)
        lam = src - i0
        M[a, i0] += 1.0 - lam
        M[a, i1] += lam
    return M


def _pick_h_tile(h):
    for t in (512, 256, 128, 64, 32, 16, 8):
        if t <= h and h % t == 0:
            return t
    return h


# --------------------------------------------------------------------------
# Parameter init (deterministic, shapes per the module's __init__).
# --------------------------------------------------------------------------
def init_params(key, in_channels):
    out_channels = in_channels // 4
    ks = jax.random.split(key, 1 + 2 * len(POOL_SIZES))
    params = {
        # nn.Conv2d(1, in_channels, 1, bias=False): weight (C,1,1,1) -> (C,)
        "conv_w": jax.random.normal(ks[0], (in_channels,), jnp.float32) * 0.5,
        "branches": [],
    }
    for i, k in enumerate(POOL_SIZES):
        dw = jax.random.normal(ks[1 + 2 * i], (in_channels,), jnp.float32) * 0.5
        pw = (jax.random.normal(ks[2 + 2 * i], (out_channels, in_channels),
                                jnp.float32) / math.sqrt(in_channels))
        params["branches"].append({
            "dw": dw,                                        # WTConv2d base depthwise 1x1
            "pw": pw,                                        # Conv2d(C, C/4, 1, bias=False)
            "gamma": jnp.ones((out_channels, k * k), jnp.float32),   # LayerNorm defaults
            "beta": jnp.zeros((out_channels, k * k), jnp.float32),
        })
    return params


# --------------------------------------------------------------------------
# Wrapper: full PyramidPooling.forward
# --------------------------------------------------------------------------
def pyramid_pooling(params, x, matmul_dtype=jnp.float32):
    # x: (N, 1, H, W) float32, NCHW.  matmul_dtype=bf16 halves HBM traffic on the
    # streamed operands (x, Ph) for v6e/v5e; accumulation stays f32 either way.
    n, cin, h, w = x.shape
    assert cin == 1
    conv_w = params["conv_w"]
    cout = params["branches"][0]["pw"].shape[0]
    n_out = len(POOL_SIZES) * cout
    h_enc, w_enc = math.ceil(h / 8), math.ceil(w / 8)
    hewe = h_enc * w_enc

    # ---- static (host-side) separable pooling / resize matrices ----
    ph_all = np.concatenate([_adaptive_pool_matrix(k, h).T for k in POOL_SIZES],
                            axis=1)                                      # (H, SK)
    pwB = np.concatenate([np.tile(_adaptive_pool_matrix(k, w).T, (1, k))
                          for k in POOL_SIZES], axis=1)                  # (W, SKK)
    selT = np.zeros((SK, SKK), np.float32)
    for b, k in enumerate(POOL_SIZES):
        for s in range(k * k):
            selT[K_OFF[b] + s // k, C_OFF[b] + s] = 1.0
    rz_all = np.concatenate(
        [np.kron(_bilinear_matrix(h_enc, k), _bilinear_matrix(w_enc, k)).T
         for k in POOL_SIZES], axis=0)                                   # (SKK, He*We)

    # ---- fold the rank-1 channel pipeline into one scalar per output channel ----
    #   weff[o] = sum_c pw[o,c] * dw[c] * conv_w[c]
    # TODO(synk): WTConv2d source not provided; only its base depthwise 1x1 path is
    # modeled here (the wt_levels=2 Haar-wavelet branches are omitted).
    weff = jnp.concatenate([bp["pw"] @ (bp["dw"] * conv_w)
                            for bp in params["branches"]], axis=0)
    weff = weff.reshape(n_out, 1).astype(jnp.float32)
    gamma_all = jnp.concatenate([bp["gamma"] for bp in params["branches"]],
                                axis=1).astype(jnp.float32)              # (Cout, SKK)
    beta_all = jnp.concatenate([bp["beta"] for bp in params["branches"]],
                               axis=1).astype(jnp.float32)

    xs = x.reshape(n, h, w).astype(matmul_dtype)                         # squeeze channel
    ph_j = jnp.asarray(ph_all).astype(matmul_dtype)

    ht = _pick_h_tile(h)
    grid = (n, h // ht)

    out = pl.pallas_call(
        _pyramid_kernel,
        out_shape=jax.ShapeDtypeStruct((n, n_out, hewe), jnp.float32),
        grid=grid,
        in_specs=[
            pl.BlockSpec((1, ht, w), lambda ni, ti: (ni, ti, 0)),        # x tile
            pl.BlockSpec((ht, SK), lambda ni, ti: (ti, 0)),              # Ph tile
            pl.BlockSpec((w, SKK), lambda ni, ti: (0, 0)),               # Pw expanded
            pl.BlockSpec((SK, SKK), lambda ni, ti: (0, 0)),              # flatten selector
            pl.BlockSpec((n_out, 1), lambda ni, ti: (0, 0)),             # folded weights
            pl.BlockSpec((cout, SKK), lambda ni, ti: (0, 0)),            # gamma
            pl.BlockSpec((cout, SKK), lambda ni, ti: (0, 0)),            # beta
            pl.BlockSpec((SKK, hewe), lambda ni, ti: (0, 0)),            # resize matrices
        ],
        out_specs=pl.BlockSpec((1, n_out, hewe), lambda ni, ti: (ni, 0, 0)),
        scratch_shapes=[pltpu.VMEM((SK, w), jnp.float32)],
        compiler_params=pltpu.CompilerParams(
            dimension_semantics=("parallel", "arbitrary")),
    )(xs, ph_j, jnp.asarray(pwB), jnp.asarray(selT), weff,
      gamma_all, beta_all, jnp.asarray(rz_all))

    return out.reshape(n, n_out, h_enc, w_enc)


if __name__ == "__main__":
    key = jax.random.PRNGKey(0)
    kx, kp = jax.random.split(key)

    in_channels = 8                 # out_channels per branch = 2, concat -> 8
    N, H, W = 2, 24, 24             # x has 1 channel (self.conv = Conv2d(1, C, 1))
    x = jax.random.normal(kx, (N, 1, H, W), jnp.float32)

    params = init_params(kp, in_channels)
    out = pyramid_pooling(params, x)
    out = jax.block_until_ready(out)

    assert out.shape == (N, in_channels, math.ceil(H / 8), math.ceil(W / 8))
    assert bool(jnp.all(jnp.isfinite(out)))
    print("KERNEL_OK")
</pallas_src>

<mosaic_0001>
module attributes {stable_mosaic.version = 11 : i64} {
  func.func @_pyramid_kernel(%arg0: i32, %arg1: i32, %arg2: memref<1x8x24xf32, #tpu.memory_space<vmem>>, %arg3: memref<8x12xf32, #tpu.memory_space<vmem>>, %arg4: memref<24x50xf32, #tpu.memory_space<vmem>>, %arg5: memref<12x50xf32, #tpu.memory_space<vmem>>, %arg6: memref<8x1xf32, #tpu.memory_space<vmem>>, %arg7: memref<2x50xf32, #tpu.memory_space<vmem>>, %arg8: memref<2x50xf32, #tpu.memory_space<vmem>>, %arg9: memref<50x9xf32, #tpu.memory_space<vmem>>, %arg10: memref<1x8x9xf32, #tpu.memory_space<vmem>>, %arg11: memref<12x24xf32, #tpu.memory_space<vmem>>) attributes {dimension_semantics = [#tpu.dimension_semantics<parallel>, #tpu.dimension_semantics<arbitrary>], iteration_bounds = array<i64: 2, 3>, scalar_prefetch = 0 : i64, scratch_operands = 1 : i64, tpu.core_type = #tpu.core_type<tc>, window_params = [{transform_indices = @transform_0, window_bounds = array<i64: 1, 8, 24>}, {transform_indices = @transform_1, window_bounds = array<i64: 8, 12>}, {pipeline_mode = #tpu.pipeline_mode<synchronous>, transform_indices = @transform_2, window_bounds = array<i64: 24, 50>}, {pipeline_mode = #tpu.pipeline_mode<synchronous>, transform_indices = @transform_3, window_bounds = array<i64: 12, 50>}, {pipeline_mode = #tpu.pipeline_mode<synchronous>, transform_indices = @transform_4, window_bounds = array<i64: 8, 1>}, {pipeline_mode = #tpu.pipeline_mode<synchronous>, transform_indices = @transform_5, window_bounds = array<i64: 2, 50>}, {pipeline_mode = #tpu.pipeline_mode<synchronous>, transform_indices = @transform_6, window_bounds = array<i64: 2, 50>}, {pipeline_mode = #tpu.pipeline_mode<synchronous>, transform_indices = @transform_7, window_bounds = array<i64: 50, 9>}, {transform_indices = @transform_8, window_bounds = array<i64: 1, 8, 9>}]} {
    %c0_i32 = arith.constant 0 : i32
    %0 = arith.cmpi eq, %arg1, %c0_i32 : i32
    %1 = arith.extui %0 : i1 to i32
    %c0_i32_0 = arith.constant 0 : i32
    %2 = arith.cmpi ne, %1, %c0_i32_0 : i32
    scf.if %2 {
      %cst_10 = arith.constant 0.000000e+00 : f32
      %13 = vector.broadcast %cst_10 : f32 to vector<12x24xf32>
      %c0_11 = arith.constant 0 : index
      %c0_12 = arith.constant 0 : index
      %14 = vector.load %arg11[%c0_11, %c0_12] : memref<12x24xf32, #tpu.memory_space<vmem>>, vector<12x24xf32>
      tpu.vector_store %arg11[%c0_11, %c0_12], %13 {strides = array<i32>} : memref<12x24xf32, #tpu.memory_space<vmem>>, vector<12x24xf32>,
    } else {
    }
    %c0 = arith.constant 0 : index
    %c0_1 = arith.constant 0 : index
    %3 = vector.load %arg11[%c0, %c0_1] : memref<12x24xf32, #tpu.memory_space<vmem>>, vector<12x24xf32>
    %c0_2 = arith.constant 0 : index
    %c0_3 = arith.constant 0 : index
    %4 = vector.load %arg3[%c0_2, %c0_3] : memref<8x12xf32, #tpu.memory_space<vmem>>, vector<8x12xf32>
    %c0_4 = arith.constant 0 : index
    %c0_5 = arith.constant 0 : index
    %c0_6 = arith.constant 0 : index
    %5 = vector.load %arg2[%c0_4, %c0_5, %c0_6] : memref<1x8x24xf32, #tpu.memory_space<vmem>>, vector<1x8x24xf32>
    %6 = vector.shape_cast %5 : vector<1x8x24xf32> to vector<8x24xf32>
    %cst = arith.constant dense<0.000000e+00> : vector<12x24xf32>
    %7 = tpu.matmul %4, %6, %cst {dimension_numbers = #tpu.dot_dimension_numbers<[0], [0], [1], [1], [0, 1, 1, 1], [], []>} : vector<8x12xf32>, vector<8x24xf32>, vector<12x24xf32> -> vector<12x24xf32>
    %8 = arith.addf %3, %7 : vector<12x24xf32>
    %c0_7 = arith.constant 0 : index
    %c0_8 = arith.constant 0 : index
    %9 = vector.load %arg11[%c0_7, %c0_8] : memref<12x24xf32, #tpu.memory_space<vmem>>, vector<12x24xf32>
    tpu.vector_store %arg11[%c0_7, %c0_8], %8 {strides = array<i32>} : memref<12x24xf32, #tpu.memory_space<vmem>>, vector<12x24xf32>,
    %c2_i32 = arith.constant 2 : i32
    %10 = arith.cmpi eq, %arg1, %c2_i32 : i32
    %11 = arith.extui %10 : i1 to i32
    %c0_i32_9 = arith.constant 0 : i32
    %12 = arith.cmpi ne, %11, %c0_i32_9 : i32
    scf.if %12 {
      %c0_10 = arith.constant 0 : index
      %c0_11 = arith.constant 0 : index
      %13 = vector.load %arg11[%c0_10, %c0_11] : memref<12x24xf32, #tpu.memory_space<vmem>>, vector<12x24xf32>
      %c0_12 = arith.constant 0 : index
      %c0_13 = arith.constant 0 : index
      %14 = vector.load %arg4[%c0_12, %c0_13] : memref<24x50xf32, #tpu.memory_space<vmem>>, vector<24x50xf32>
      %cst_14 = arith.constant dense<0.000000e+00> : vector<12x50xf32>
      %15 = tpu.matmul %13, %14, %cst_14 {dimension_numbers = #tpu.dot_dimension_numbers<[1], [0], [0], [1], [0, 0, 1, 1], [], []>} : vector<12x24xf32>, vector<24x50xf32>, vector<12x50xf32> -> vector<12x50xf32>
      %c0_15 = arith.constant 0 : index
      %c0_16 = arith.constant 0 : index
      %16 = vector.load %arg5[%c0_15, %c0_16] : memref<12x50xf32, #tpu.memory_space<vmem>>, vector<12x50xf32>
      %17 = arith.mulf %16, %15 : vector<12x50xf32>
      %cst_17 = arith.constant dense<0.000000e+00> : vector<50xf32>
      %18 = vector.multi_reduction <add>, %17, %cst_17 [0] : vector<12x50xf32> to vector<50xf32>
      %19 = vector.shape_cast %18 : vector<50xf32> to vector<1x50xf32>
      %c0_18 = arith.constant 0 : index
      %c0_19 = arith.constant 0 : index
      %20 = vector.load %arg6[%c0_18, %c0_19] : memref<8x1xf32, #tpu.memory_space<vmem>>, vector<8x1xf32>
      %21 = vector.extract_strided_slice %19 {offsets = [0, 0], sizes = [1, 1], strides = [1, 1]} : vector<1x50xf32> to vector<1x1xf32>
      %22 = vector.extract_strided_slice %20 {offsets = [0, 0], sizes = [2, 1], strides = [1, 1]} : vector<8x1xf32> to vector<2x1xf32>
      %23 = vector.broadcast %21 : vector<1x1xf32> to vector<2x1xf32>
      %24 = arith.mulf %22, %23 : vector<2x1xf32>
      %25 = vector.shape_cast %24 : vector<2x1xf32> to vector<1x2x1xf32>
      %cst_20 = arith.constant dense<0.000000e+00> : vector<1xf32>
      %26 = vector.multi_reduction <add>, %25, %cst_20 [1, 2] : vector<1x2x1xf32> to vector<1xf32>
      %27 = vector.shape_cast %26 : vector<1xf32> to vector<1x1x1xf32>
      %28 = vector.extract %27[0, 0, 0] : f32 from vector<1x1x1xf32>
      %29 = vector.broadcast %28 : f32 to vector<1x1xf32>
      %cst_21 = arith.constant 2.000000e+00 : f32
      %30 = vector.broadcast %cst_21 : f32 to vector<1x1xf32>
      %31 = arith.divf %29, %30 : vector<1x1xf32>
      %32 = vector.broadcast %31 : vector<1x1xf32> to vector<2x1xf32>
      %33 = arith.subf %24, %32 : vector<2x1xf32>
      %34 = arith.mulf %33, %33 : vector<2x1xf32>
      %35 = vector.shape_cast %34 : vector<2x1xf32> to vector<1x2x1xf32>
      %cst_22 = arith.constant dense<0.000000e+00> : vector<1xf32>
      %36 = vector.multi_reduction <add>, %35, %cst_22 [1, 2] : vector<1x2x1xf32> to vector<1xf32>
      %37 = vector.shape_cast %36 : vector<1xf32> to vector<1x1x1xf32>
      %38 = vector.extract %37[0, 0, 0] : f32 from vector<1x1x1xf32>
      %39 = vector.broadcast %38 : f32 to vector<1x1xf32>
      %cst_23 = arith.constant 2.000000e+00 : f32
      %40 = vector.broadcast %cst_23 : f32 to vector<1x1xf32>
      %41 = arith.divf %39, %40 : vector<1x1xf32>
      %42 = vector.broadcast %31 : vector<1x1xf32> to vector<2x1xf32>
      %43 = arith.subf %24, %42 : vector<2x1xf32>
      %cst_24 = arith.constant 9.99999974E-6 : f32
      %44 = vector.broadcast %cst_24 : f32 to vector<1x1xf32>
      %45 = arith.addf %41, %44 : vector<1x1xf32>
      %46 = math.rsqrt %45 : vector<1x1xf32>
      %47 = vector.broadcast %46 : vector<1x1xf32> to vector<2x1xf32>
      %48 = arith.mulf %43, %47 : vector<2x1xf32>
      %c0_25 = arith.constant 0 : index
      %c0_26 = arith.constant 0 : index
      %49 = vector.load %arg7[%c0_25, %c0_26] : memref<2x50xf32, #tpu.memory_space<vmem>>, vector<2x1xf32>
      %50 = arith.mulf %48, %49 : vector<2x1xf32>
      %c0_27 = arith.constant 0 : index
      %c0_28 = arith.constant 0 : index
      %51 = vector.load %arg8[%c0_27, %c0_28] : memref<2x50xf32, #tpu.memory_space<vmem>>, vector<2x1xf32>
      %52 = arith.addf %50, %51 : vector<2x1xf32>
      %cst_29 = arith.constant 0.000000e+00 : f32
      %53 = vector.broadcast %cst_29 : f32 to vector<2x1xf32>
      %54 = arith.maximumf %52, %53 : vector<2x1xf32>
      %c0_30 = arith.constant 0 : index
      %c0_31 = arith.constant 0 : index
      %55 = vector.load %arg9[%c0_30, %c0_31] : memref<50x9xf32, #tpu.memory_space<vmem>>, vector<1x9xf32>
      %cst_32 = arith.constant dense<0.000000e+00> : vector<2x9xf32>
      %56 = tpu.matmul %54, %55, %cst_32 {dimension_numbers = #tpu.dot_dimension_numbers<[1], [0], [0], [1], [0, 0, 1, 1], [], []>} : vector<2x1xf32>, vector<1x9xf32>, vector<2x9xf32> -> vector<2x9xf32>
      %c0_33 = arith.constant 0 : index
      %c0_34 = arith.constant 0 : index
      %c0_35 = arith.constant 0 : index
      %57 = vector.load %arg10[%c0_33, %c0_34, %c0_35] : memref<1x8x9xf32, #tpu.memory_space<vmem>>, vector<1x2x9xf32>
      %58 = vector.shape_cast %57 : vector<1x2x9xf32> to vector<2x9xf32>
      %59 = vector.shape_cast %56 : vector<2x9xf32> to vector<1x2x9xf32>
      tpu.vector_store %arg10[%c0_33, %c0_34, %c0_35], %59 {strides = array<i32>} : memref<1x8x9xf32, #tpu.memory_space<vmem>>, vector<1x2x9xf32>,
      %60 = vector.extract_strided_slice %19 {offsets = [0, 1], sizes = [1, 4], strides = [1, 1]} : vector<1x50xf32> to vector<1x4xf32>
      %61 = vector.extract_strided_slice %20 {offsets = [2, 0], sizes = [2, 1], strides = [1, 1]} : vector<8x1xf32> to vector<2x1xf32>
      %62 = vector.broadcast %61 : vector<2x1xf32> to vector<2x4xf32>
      %63 = vector.broadcast %60 : vector<1x4xf32> to vector<2x4xf32>
      %64 = arith.mulf %62, %63 : vector<2x4xf32>
      %65 = vector.shape_cast %64 : vector<2x4xf32> to vector<1x2x4xf32>
      %cst_36 = arith.constant dense<0.000000e+00> : vector<1xf32>
      %66 = vector.multi_reduction <add>, %65, %cst_36 [1, 2] : vector<1x2x4xf32> to vector<1xf32>
      %67 = vector.shape_cast %66 : vector<1xf32> to vector<1x1x1xf32>
      %68 = vector.extract %67[0, 0, 0] : f32 from vector<1x1x1xf32>
      %69 = vector.broadcast %68 : f32 to vector<1x1xf32>
      %cst_37 = arith.constant 8.000000e+00 : f32
      %70 = vector.broadcast %cst_37 : f32 to vector<1x1xf32>
      %71 = arith.divf %69, %70 : vector<1x1xf32>
      %72 = vector.broadcast %71 : vector<1x1xf32> to vector<2x4xf32>
      %73 = arith.subf %64, %72 : vector<2x4xf32>
      %74 = arith.mulf %73, %73 : vector<2x4xf32>
      %75 = vector.shape_cast %74 : vector<2x4xf32> to vector<1x2x4xf32>
      %cst_38 = arith.constant dense<0.000000e+00> : vector<1xf32>
      %76 = vector.multi_reduction <add>, %75, %cst_38 [1, 2] : vector<1x2x4xf32> to vector<1xf32>
      %77 = vector.shape_cast %76 : vector<1xf32> to vector<1x1x1xf32>
      %78 = vector.extract %77[0, 0, 0] : f32 from vector<1x1x1xf32>
      %79 = vector.broadcast %78 : f32 to vector<1x1xf32>
      %cst_39 = arith.constant 8.000000e+00 : f32
      %80 = vector.broadcast %cst_39 : f32 to vector<1x1xf32>
      %81 = arith.divf %79, %80 : vector<1x1xf32>
      %82 = vector.broadcast %71 : vector<1x1xf32> to vector<2x4xf32>
      %83 = arith.subf %64, %82 : vector<2x4xf32>
      %cst_40 = arith.constant 9.99999974E-6 : f32
      %84 = vector.broadcast %cst_40 : f32 to vector<1x1xf32>
      %85 = arith.addf %81, %84 : vector<1x1xf32>
      %86 = math.rsqrt %85 : vector<1x1xf32>
      %87 = vector.broadcast %86 : vector<1x1xf32> to vector<2x4xf32>
      %88 = arith.mulf %83, %87 : vector<2x4xf32>
      %c0_41 = arith.constant 0 : index
      %c1 = arith.constant 1 : index
      %89 = vector.load %arg7[%c0_41, %c1] : memref<2x50xf32, #tpu.memory_space<vmem>>, vector<2x4xf32>
      %90 = arith.mulf %88, %89 : vector<2x4xf32>
      %c0_42 = arith.constant 0 : index
      %c1_43 = arith.constant 1 : index
      %91 = vector.load %arg8[%c0_42, %c1_43] : memref<2x50xf32, #tpu.memory_space<vmem>>, vector<2x4xf32>
      %92 = arith.addf %90, %91 : vector<2x4xf32>
      %cst_44 = arith.constant 0.000000e+00 : f32
      %93 = vector.broadcast %cst_44 : f32 to vector<2x4xf32>
      %94 = arith.maximumf %92, %93 : vector<2x4xf32>
      %c1_45 = arith.constant 1 : index
      %c0_46 = arith.constant 0 : index
      %95 = vector.load %arg9[%c1_45, %c0_46] : memref<50x9xf32, #tpu.memory_space<vmem>>, vector<4x9xf32>
      %cst_47 = arith.constant dense<0.000000e+00> : vector<2x9xf32>
      %96 = tpu.matmul %94, %95, %cst_47 {dimension_numbers = #tpu.dot_dimension_numbers<[1], [0], [0], [1], [0, 0, 1, 1], [], []>} : vector<2x4xf32>, vector<4x9xf32>, vector<2x9xf32> -> vector<2x9xf32>
      %c0_48 = arith.constant 0 : index
      %c2 = arith.constant 2 : index
      %c0_49 = arith.constant 0 : index
      %97 = vector.load %arg10[%c0_48, %c2, %c0_49] : memref<1x8x9xf32, #tpu.memory_space<vmem>>, vector<1x2x9xf32>
      %98 = vector.shape_cast %97 : vector<1x2x9xf32> to vector<2x9xf32>
      %99 = vector.shape_cast %96 : vector<2x9xf32> to vector<1x2x9xf32>
      tpu.vector_store %arg10[%c0_48, %c2, %c0_49], %99 {strides = array<i32>} : memref<1x8x9xf32, #tpu.memory_space<vmem>>, vector<1x2x9xf32>,
      %100 = vector.extract_strided_slice %19 {offsets = [0, 5], sizes = [1, 9], strides = [1, 1]} : vector<1x50xf32> to vector<1x9xf32>
      %101 = vector.extract_strided_slice %20 {offsets = [4, 0], sizes = [2, 1], strides = [1, 1]} : vector<8x1xf32> to vector<2x1xf32>
      %102 = vector.broadcast %101 : vector<2x1xf32> to vector<2x9xf32>
      %103 = vector.broadcast %100 : vector<1x9xf32> to vector<2x9xf32>
      %104 = arith.mulf %102, %103 : vector<2x9xf32>
      %105 = vector.shape_cast %104 : vector<2x9xf32> to vector<1x2x9xf32>
      %cst_50 = arith.constant dense<0.000000e+00> : vector<1xf32>
      %106 = vector.multi_reduction <add>, %105, %cst_50 [1, 2] : vector<1x2x9xf32> to vector<1xf32>
      %107 = vector.shape_cast %106 : vector<1xf32> to vector<1x1x1xf32>
      %108 = vector.extract %107[0, 0, 0] : f32 from vector<1x1x1xf32>
      %109 = vector.broadcast %108 : f32 to vector<1x1xf32>
      %cst_51 = arith.constant 1.800000e+01 : f32
      %110 = vector.broadcast %cst_51 : f32 to vector<1x1xf32>
      %111 = arith.divf %109, %110 : vector<1x1xf32>
      %112 = vector.broadcast %111 : vector<1x1xf32> to vector<2x9xf32>
      %113 = arith.subf %104, %112 : vector<2x9xf32>
      %114 = arith.mulf %113, %113 : vector<2x9xf32>
      %115 = vector.shape_cast %114 : vector<2x9xf32> to vector<1x2x9xf32>
      %cst_52 = arith.constant dense<0.000000e+00> : vector<1xf32>
      %116 = vector.multi_reduction <add>, %115, %cst_52 [1, 2] : vector<1x2x9xf32> to vector<1xf32>
      %117 = vector.shape_cast %116 : vector<1xf32> to vector<1x1x1xf32>
      %118 = vector.extract %117[0, 0, 0] : f32 from vector<1x1x1xf32>
      %119 = vector.broadcast %118 : f32 to vector<1x1xf32>
      %cst_53 = arith.constant 1.800000e+01 : f32
      %120 = vector.broadcast %cst_53 : f32 to vector<1x1xf32>
      %121 = arith.divf %119, %120 : vector<1x1xf32>
      %122 = vector.broadcast %111 : vector<1x1xf32> to vector<2x9xf32>
      %123 = arith.subf %104, %122 : vector<2x9xf32>
      %cst_54 = arith.constant 9.99999974E-6 : f32
      %124 = vector.broadcast %cst_54 : f32 to vector<1x1xf32>
      %125 = arith.addf %121, %124 : vector<1x1xf32>
      %126 = math.rsqrt %125 : vector<1x1xf32>
      %127 = vector.broadcast %126 : vector<1x1xf32> to vector<2x9xf32>
      %128 = arith.mulf %123, %127 : vector<2x9xf32>
      %c0_55 = arith.constant 0 : index
      %c5 = arith.constant 5 : index
      %129 = vector.load %arg7[%c0_55, %c5] : memref<2x50xf32, #tpu.memory_space<vmem>>, vector<2x9xf32>
      %130 = arith.mulf %128, %129 : vector<2x9xf32>
      %c0_56 = arith.constant 0 : index
      %c5_57 = arith.constant 5 : index
      %131 = vector.load %arg8[%c0_56, %c5_57] : memref<2x50xf32, #tpu.memory_space<vmem>>, vector<2x9xf32>
      %132 = arith.addf %130, %131 : vector<2x9xf32>
      %cst_58 = arith.constant 0.000000e+00 : f32
      %133 = vector.broadcast %cst_58 : f32 to vector<2x9xf32>
      %134 = arith.maximumf %132, %133 : vector<2x9xf32>
      %c5_59 = arith.constant 5 : index
      %c0_60 = arith.constant 0 : index
      %135 = vector.load %arg9[%c5_59, %c0_60] : memref<50x9xf32, #tpu.memory_space<vmem>>, vector<9x9xf32>
      %cst_61 = arith.constant dense<0.000000e+00> : vector<2x9xf32>
      %136 = tpu.matmul %134, %135, %cst_61 {dimension_numbers = #tpu.dot_dimension_numbers<[1], [0], [0], [1], [0, 0, 1, 1], [], []>} : vector<2x9xf32>, vector<9x9xf32>, vector<2x9xf32> -> vector<2x9xf32>
      %c0_62 = arith.constant 0 : index
      %c4 = arith.constant 4 : index
      %c0_63 = arith.constant 0 : index
      %137 = vector.load %arg10[%c0_62, %c4, %c0_63] : memref<1x8x9xf32, #tpu.memory_space<vmem>>, vector<1x2x9xf32>
      %138 = vector.shape_cast %137 : vector<1x2x9xf32> to vector<2x9xf32>
      %139 = vector.shape_cast %136 : vector<2x9xf32> to vector<1x2x9xf32>
      tpu.vector_store %arg10[%c0_62, %c4, %c0_63], %139 {strides = array<i32>} : memref<1x8x9xf32, #tpu.memory_space<vmem>>, vector<1x2x9xf32>,
      %140 = vector.extract_strided_slice %19 {offsets = [0, 14], sizes = [1, 36], strides = [1, 1]} : vector<1x50xf32> to vector<1x36xf32>
      %141 = vector.extract_strided_slice %20 {offsets = [6, 0], sizes = [2, 1], strides = [1, 1]} : vector<8x1xf32> to vector<2x1xf32>
      %142 = vector.broadcast %141 : vector<2x1xf32> to vector<2x36xf32>
      %143 = vector.broadcast %140 : vector<1x36xf32> to vector<2x36xf32>
      %144 = arith.mulf %142, %143 : vector<2x36xf32>
      %145 = vector.shape_cast %144 : vector<2x36xf32> to vector<1x2x36xf32>
      %cst_64 = arith.constant dense<0.000000e+00> : vector<1xf32>
      %146 = vector.multi_reduction <add>, %145, %cst_64 [1, 2] : vector<1x2x36xf32> to vector<1xf32>
      %147 = vector.shape_cast %146 : vector<1xf32> to vector<1x1x1xf32>
      %148 = vector.extract %147[0, 0, 0] : f32 from vector<1x1x1xf32>
      %149 = vector.broadcast %148 : f32 to vector<1x1xf32>
      %cst_65 = arith.constant 7.200000e+01 : f32
      %150 = vector.broadcast %cst_65 : f32 to vector<1x1xf32>
      %151 = arith.divf %149, %150 : vector<1x1xf32>
      %152 = vector.broadcast %151 : vector<1x1xf32> to vector<2x36xf32>
      %153 = arith.subf %144, %152 : vector<2x36xf32>
      %154 = arith.mulf %153, %153 : vector<2x36xf32>
      %155 = vector.shape_cast %154 : vector<2x36xf32> to vector<1x2x36xf32>
      %cst_66 = arith.constant dense<0.000000e+00> : vector<1xf32>
      %156 = vector.multi_reduction <add>, %155, %cst_66 [1, 2] : vector<1x2x36xf32> to vector<1xf32>
      %157 = vector.shape_cast %156 : vector<1xf32> to vector<1x1x1xf32>
      %158 = vector.extract %157[0, 0, 0] : f32 from vector<1x1x1xf32>
      %159 = vector.broadcast %158 : f32 to vector<1x1xf32>
      %cst_67 = arith.constant 7.200000e+01 : f32
      %160 = vector.broadcast %cst_67 : f32 to vector<1x1xf32>
      %161 = arith.divf %159, %160 : vector<1x1xf32>
      %162 = vector.broadcast %151 : vector<1x1xf32> to vector<2x36xf32>
      %163 = arith.subf %144, %162 : vector<2x36xf32>
      %cst_68 = arith.constant 9.99999974E-6 : f32
      %164 = vector.broadcast %cst_68 : f32 to vector<1x1xf32>
      %165 = arith.addf %161, %164 : vector<1x1xf32>
      %166 = math.rsqrt %165 : vector<1x1xf32>
      %167 = vector.broadcast %166 : vector<1x1xf32> to vector<2x36xf32>
      %168 = arith.mulf %163, %167 : vector<2x36xf32>
      %c0_69 = arith.constant 0 : index
      %c14 = arith.constant 14 : index
      %169 = vector.load %arg7[%c0_69, %c14] : memref<2x50xf32, #tpu.memory_space<vmem>>, vector<2x36xf32>
      %170 = arith.mulf %168, %169 : vector<2x36xf32>
      %c0_70 = arith.constant 0 : index
      %c14_71 = arith.constant 14 : index
      %171 = vector.load %arg8[%c0_70, %c14_71] : memref<2x50xf32, #tpu.memory_space<vmem>>, vector<2x36xf32>
      %172 = arith.addf %170, %171 : vector<2x36xf32>
      %cst_72 = arith.constant 0.000000e+00 : f32
      %173 = vector.broadcast %cst_72 : f32 to vector<2x36xf32>
      %174 = arith.maximumf %172, %173 : vector<2x36xf32>
      %c14_73 = arith.constant 14 : index
      %c0_74 = arith.constant 0 : index
      %175 = vector.load %arg9[%c14_73, %c0_74] : memref<50x9xf32, #tpu.memory_space<vmem>>, vector<36x9xf32>
      %cst_75 = arith.constant dense<0.000000e+00> : vector<2x9xf32>
      %176 = tpu.matmul %174, %175, %cst_75 {dimension_numbers = #tpu.dot_dimension_numbers<[1], [0], [0], [1], [0, 0, 1, 1], [], []>} : vector<2x36xf32>, vector<36x9xf32>, vector<2x9xf32> -> vector<2x9xf32>
      %c0_76 = arith.constant 0 : index
      %c6 = arith.constant 6 : index
      %c0_77 = arith.constant 0 : index
      %177 = vector.load %arg10[%c0_76, %c6, %c0_77] : memref<1x8x9xf32, #tpu.memory_space<vmem>>, vector<1x2x9xf32>
      %178 = vector.shape_cast %177 : vector<1x2x9xf32> to vector<2x9xf32>
      %179 = vector.shape_cast %176 : vector<2x9xf32> to vector<1x2x9xf32>
      tpu.vector_store %arg10[%c0_76, %c6, %c0_77], %179 {strides = array<i32>} : memref<1x8x9xf32, #tpu.memory_space<vmem>>, vector<1x2x9xf32>,
    } else {
    }
    return
  }
  func.func @transform_0(%arg0: i32, %arg1: i32) -> (i32, i32, i32) {
    %c0_i32 = arith.constant 0 : i32
    %c0_i32_0 = arith.constant 0 : i32
    return %arg0, %arg1, %c0_i32 : i32, i32, i32
  }
  func.func @transform_1(%arg0: i32, %arg1: i32) -> (i32, i32) {
    %c0_i32 = arith.constant 0 : i32
    %c0_i32_0 = arith.constant 0 : i32
    return %arg1, %c0_i32 : i32, i32
  }
  func.func @transform_2(%arg0: i32, %arg1: i32) -> (i32, i32) {
    %c0_i32 = arith.constant 0 : i32
    %c0_i32_0 = arith.constant 0 : i32
    %c0_i32_1 = arith.constant 0 : i32
    return %c0_i32, %c0_i32_0 : i32, i32
  }
  func.func @transform_3(%arg0: i32, %arg1: i32) -> (i32, i32) {
    %c0_i32 = arith.constant 0 : i32
    %c0_i32_0 = arith.constant 0 : i32
    %c0_i32_1 = arith.constant 0 : i32
    return %c0_i32, %c0_i32_0 : i32, i32
  }
  func.func @transform_4(%arg0: i32, %arg1: i32) -> (i32, i32) {
    %c0_i32 = arith.constant 0 : i32
    %c0_i32_0 = arith.constant 0 : i32
    %c0_i32_1 = arith.constant 0 : i32
    return %c0_i32, %c0_i32_0 : i32, i32
  }
  func.func @transform_5(%arg0: i32, %arg1: i32) -> (i32, i32) {
    %c0_i32 = arith.constant 0 : i32
    %c0_i32_0 = arith.constant 0 : i32
    %c0_i32_1 = arith.constant 0 : i32
    return %c0_i32, %c0_i32_0 : i32, i32
  }
  func.func @transform_6(%arg0: i32, %arg1: i32) -> (i32, i32) {
    %c0_i32 = arith.constant 0 : i32
    %c0_i32_0 = arith.constant 0 : i32
    %c0_i32_1 = arith.constant 0 : i32
    return %c0_i32, %c0_i32_0 : i32, i32
  }
  func.func @transform_7(%arg0: i32, %arg1: i32) -> (i32, i32) {
    %c0_i32 = arith.constant 0 : i32
    %c0_i32_0 = arith.constant 0 : i32
    %c0_i32_1 = arith.constant 0 : i32
    return %c0_i32, %c0_i32_0 : i32, i32
  }
  func.func @transform_8(%arg0: i32, %arg1: i32) -> (i32, i32, i32) {
    %c0_i32 = arith.constant 0 : i32
    %c0_i32_0 = arith.constant 0 : i32
    %c0_i32_1 = arith.constant 0 : i32
    return %arg0, %c0_i32, %c0_i32_0 : i32, i32, i32
  }
}

</mosaic_0001>

<bundles_post_ra>
// kernel: tpu_custom_call.1
= control target key start
LH: loop header
LB: loop body
LE: loop exit
PB: predicated region body
PF: predicated region fallthrough
CT: control target
= control target key end

     0   :  { %13 = vsyncpa [#allocation4], 0  ;;  %s1852_s0 = inlined_call_operand.vmem [shape: f32[2,24,24], index: 0, kind: input, shape index: {}]   ;;  %s1853_s1 = inlined_call_operand.vmem [shape: f32[24,12], index: 1, kind: input, shape index: {}]   ;;  %s1854_s2 = inlined_call_operand.vmem [shape: f32[24,50], index: 2, kind: input, shape index: {}]   ;;  %s1855_s3 = inlined_call_operand.vmem [shape: f32[12,50], index: 3, kind: input, shape index: {}]   ;;  %s1856_s4 = inlined_call_operand.vmem [shape: f32[8,1], index: 4, kind: input, shape index: {}]   ;;  %s1857_s5 = inlined_call_operand.vmem [shape: f32[2,50], index: 5, kind: input, shape index: {}]   ;;  %s1858_s6 = inlined_call_operand.vmem [shape: f32[2,50], index: 6, kind: input, shape index: {}]   ;;  %s1859_s7 = inlined_call_operand.vmem [shape: f32[50,9], index: 7, kind: input, shape index: {}]   ;;  %s1860_s8 = inlined_call_operand.hbm [shape: f32[2,8,9], index: 8, kind: output, shape index: {}]  }
   0x1   :  { %15 = vsyncpa [#allocation4 + $0x1], 0  ;;  %s1576_s27 = smov 0   ;;  %s1578_s28 = smov 0  }
   0x2   :  { %s1580_s29 = smov 0   ;;  %s1582_s30 = smov 0  }
   0x3   :  { %s1584_s9 = smov 0   ;;  %s1586_s10 = smov 0  }
   0x4   :  { %s1588_s11 = smov 0   ;;  %s1590_s12 = smov 0  }
   0x5 LB: > { %1865 = sst [smem:[#allocation6_spill]] %s1499_s29  ;;  %s1213_s13 = sadd.s32 4294967295, %s1519_s12   ;;  %s1519_s12 = sphi %s1590_s12, %s21_s12   ;;  %s1515_s11 = sphi %s1588_s11, %s1878_s11   ;;  %s1511_s10 = sphi %s1586_s10, %s1877_s10   ;;  %s1507_s9 = sphi %s1584_s9, %s1876_s9   ;;  %s1503_s30 = sphi %s1582_s30, %s1875_s30   ;;  %s1499_s29 = sphi %s1580_s29, %s1874_s29   ;;  %s1495_s28 = sphi %s1578_s28, %s1880_s28   ;;  %s1491_s27 = sphi %s1576_s27, %s1879_s27  }
   0x6   : > { %1866 = sst [smem:[#allocation7_spill]] %s1511_s10  ;;  %s1214_s14 = sadd.s32 4294967294, %s1519_s12  }
   0x7   : > { %1867 = sst [smem:[#allocation8_spill]] %s1515_s11  ;;  %s30_s15 = sadd.s32 1, %s1511_s10 }
   0x8   : > { %p31_p0 = scmp.ge.s32.totalorder %s30_s15, 3  ;;  %s33_s16 = sadd.s32 1, %s1515_s11 }
   0x9   : > { %p230_p1 = scmp.ne.s32.totalorder %s1499_s29, %s1495_s28  ;;  %p231_p2 = scmp.eq.s32.totalorder %s1213_s13, 5 }
   0xa   : > { %s1882_s15 = smov (%p31_p0, %s30_s15), 0  ;;  %s1884_s16 = smov (!%p31_p0, %s33_s16), %s1515_s11 }
   0xb   : > { %1868 = sst [smem:[#allocation9_spill]] %s1882_s15  ;;  %p1625_p3 = por %p231_p2, %p230_p1 }
   0xc   : > { %p236_p4 = scmp.ne.s32.totalorder %s1495_s28, %s1491_s27  ;;  %p35_p5 = scmp.ge.s32.totalorder %s1884_s16, 2 }
   0xd   : > { %p237_p6 = scmp.eq.s32.totalorder %s1214_s14, 5  ;;  %p1217_p7 = scmp.ge.s32.totalorder %s1519_s12, 1 }
   0xe   : > { %p291_p8 = scmp.lt.s32.totalorder %s1519_s12, 7  ;;  %s1886_s16 = smov (%p35_p5, %s1884_s16), 0 }
   0xf   : > { %1870 = sst [smem:[#allocation10_spill]] %s1886_s16  ;;  %p1635_p9 = por %p237_p6, %p236_p4 }
  0x10   : > { %p292_p10 = pnand %p1217_p7, %p291_p8  ;;  %s217_s19 = ssub.s32 %s1515_s11, %s1886_s16 }
  0x11   : > { %s220_s20 = sadd.s32 1, %s1499_s29  ;;  %p218_p11 = scmp.eq.s32.totalorder %s217_s19, 0 }
  0x12   : > { %295 = sbr.rel (%p292_p10) target bundleno = 2467 (0x9a3), region = 52  ;;  %s329_s22 = sand.u32 (!%p292_p10), 1, %s1495_s28  }
  0x13   : > { %s1643_s21 = scalar_select %p218_p11, %s1499_s29, %s220_s20  }
  0x14   : > { %p332_p12 = scmp.lt.s32.totalorder (!%p292_p10), %s1507_s9, 1  ;;  %s1218_s23 = sshll.u32 (!%p292_p10), %s329_s22, 3 }
  0x15   : > { %1872 = sst [smem:[#allocation11_spill]] %s1643_s21  ;;  %p334_p13 = scmp.lt.s32.totalorder (!%p292_p10), %s1503_s30, 2 }
  0x16   : > { %s1658_s29 = scalar_lea.vmem (!%p292_p10), [#allocation3], %s1218_s23  ;;  %p1221_p0 = scmp.ne.s32.totalorder (!%p292_p10), %s1503_s30, 0 }
  0x19   : > { %s333_s24 = scalar_select %p332_p12, %s1507_s9, 1 }
  0x1a   : > { %s335_s25 = scalar_select %p334_p13, %s1503_s30, 2 }
  0x1b   : > { %s1318_s26 = smul.u32 3, %s333_s24  ;;  %vm348_vm0 = vcmask (!%p1221_p0), 195584   ;;  %vm350_vm1 = vcmask (!%p1221_p0), 191488   ;;  %v1521_v0 = vmov (!%p1221_p0), 0.0  }
  0x1c   : > { %s1220_s13 = sshll.u32 %s335_s25, 3  ;;  %347 = sbr.rel (%p1221_p0) target bundleno = 35 (0x23), region = 56  ;;  %349 = vst.msk [vmem:[#allocation2] sm:$0xff] (!%p1221_p0), %vm348_vm0, %v1521_v0 }
  0x1d   : > { %s337_s14 = sadd.s32 %s1318_s26, %s335_s25  ;;  %s343_s16 = scalar_lea.vmem %s1853_s1, %s1220_s13  ;;  %351 = vst.msk [vmem:[#allocation2 + $0x8] sm:$0xf] (!%p1221_p0), %vm350_vm1, %v1521_v0 }
  0x1e   : > { %s1219_s15 = sshll.u32 %s337_s14, 3 }
  0x1f   : > { %s339_s21 = scalar_lea.vmem %s1852_s0, %s1219_s15 }
  0x23 PF: > { %v354_v1 = vld [vmem:[%s343_s16] sm:$0xff]  ;;  %vm388_vm2 = vcmask 64512   ;;  %vm474_vm3 = vcmask 191488   ;;  %vm472_vm4 = vcmask 195584   ;;  %p1224_p1 = scmp.ne.s32.totalorder %s1503_s30, 2 }
  0x24   : > { %356 = vxpose.xlu0.b32.start.end [1/1] (short) (narrow) %v354_v1, 16  ;;  %v355_v2 = vld [vmem:[%s339_s21] sm:$0xff]  ;;  %v353_v5 = vld [vmem:[#allocation2 + $0x8] sm:$0xf]  ;;  %v484_v15 = vld [vmem:[%s1854_s2 + $0x10] sm:$0xff] (!%p1224_p1)  ;;  %v1522_v17 = vmov (!%p1224_p1), 0  }
  0x25   : > { %1260 = vmatprep.subr.mxu0 %v355_v2  ;;  %v352_v6 = vld [vmem:[#allocation2] sm:$0xff]  ;;  %v483_v12 = vld [vmem:[%s1854_s2 + $0x8] sm:$0xff] (!%p1224_p1)  ;;  %vm572_vm5 = vcmask (!%p1224_p1), 404480   ;;  %vm570_vm6 = vcmask (!%p1224_p1), 408576   ;;  %vm583_vm7 = vcmask (!%p1224_p1), 1024   ;;  %s1523_s19 = smov (!%p1224_p1), 123  }
  0x26   : > { %1261 = vmatpush3.msra.mxu0 %v355_v2  ;;  %v482_v11 = vld [vmem:[%s1854_s2] sm:$0xff] (!%p1224_p1)  ;;  %v567_v18 = vld [vmem:[%s1855_s3 + $0x8] sm:$0xf] (!%p1224_p1)  ;;  %s1524_s20 = smov (!%p1224_p1), 127   ;;  %vm711_vm8 = vcmask (!%p1224_p1), 25600   ;;  %vm624_vm9 = vcmask (!%p1224_p1), 1040384  }
  0x27   : > { %v1304_v13 = vpack.c.bf16 (!%p1224_p1), %v483_v12, %v482_v11  ;;  %v566_v19 = vld [vmem:[%s1855_s3] sm:$0xff] (!%p1224_p1)  ;;  %v1525_v55 = vmov (!%p1224_p1), 0.0   ;;  %vm1526_vm10 = vmmov (!%p1224_p1), 0   ;;  %vm620_vm11 = vcmask (!%p1224_p1), 7168   ;;  %s1527_s26 = smov (!%p1224_p1), 114  }
  0x28   : > { %v581_v32 = vld [vmem:[%s1856_s4] sm:$0xff] (!%p1224_p1)  ;;  %1279 = vmatprep.subr.mxu1 (!%p1224_p1), %v1525_v55  ;;  %1281 = vmatprep.mubr.msk.f32.mxu1 (!%p1224_p1), %vm1526_vm10, %v1525_v55  ;;  %vm698_vm12 = vcmask (!%p1224_p1), 66560   ;;  %vm978_vm13 = vcmask (!%p1224_p1), 287744   ;;  %vm1529_vm14 = vmmov (!%p1224_p1), 1   ;;  %vm897_vm0 = vcmask (!%p1224_p1), 72704  }
  0x29   : > { %1305 = vmatprep.subr.bf16.mxu0 (!%p1224_p1), %v1304_v13  ;;  %v619_v54 = vld [vmem:[%s1859_s7] sm:$0x1] (!%p1224_p1)  ;;  %vm1310_vm15 = vmpackc.low (!%p1224_p1), %vm624_vm9, %vm1529_vm14  ;;  %vm766_vm1 = vcmask (!%p1224_p1), 1043456  }
  0x2a   : > { %v616_v12 = vld [vmem:[%s1858_s6] sm:$0x3] (!%p1224_p1) }
  0x4d   : > { %1416 = vset.pattern.permute.xlu0 (!%p1224_p1), %v1522_v17 }
  0xa4   : > { %v372_v3 = vpop.trf.xlu0 }
  0xa5   : > { %1262 = vmatprep.mubr.msk.f32.mxu0 %vm388_vm2, %v372_v3 }
  0xa8   : > { %v373_v4 = vpop.trf.xlu0 }
  0xa9   : > { %1263 = vmatmul.mubr.msk.f32.vlgmr.msra.gmra.mrb[0].mxu0 %vm388_vm2, %v373_v4  ;;  %vm763_vm2 = vcmask (!%p1224_p1), 31744  }
  0xaa   : > { %1307 = vmatpush3.bf16.msra.mxu0 (!%p1224_p1), %v1304_v13 }
  0xab   : > { %1269 = vmatprep.subr.mxu0 (!%p1224_p1), %v484_v15 }
  0xae   : > { %1270 = vmatpush3.msra.mxu0 (!%p1224_p1), %v484_v15 }
  0xaf   : > { %1274 = vmatprep.subr.mxu0 (!%p1224_p1), %v1525_v55 }
 0x17a   : > { %479 = sbr.rel (%p1224_p1) target bundleno = 2443 (0x98b), region = 60 }
 0x17c   : > { %v1264_v7 = vpop.f32.mrb[0].mxu0 }
 0x17d   : > { %v471_v8 = vadd.f32 %v1264_v7, %v353_v5  ;;  %v461_v9 = vpop.f32.mrb[1].mxu0 }
 0x17e   : > { %v470_v10 = vadd.f32 %v461_v9, %v352_v6 }
 0x17f   : > { %475 = vst.msk [vmem:[#allocation2 + $0x8] sm:$0xf] %vm474_vm3, %v471_v8  ;;  %vm1034_vm3 = vcmask (!%p1224_p1), 293888  }
 0x180   : > { %473 = vst.msk [vmem:[#allocation2] sm:$0xff] %vm472_vm4, %v470_v10  ;;  %v614_v10 = vld [vmem:[%s1857_s5] sm:$0x3] (!%p1224_p1) }
 0x186   : > { %v481_v16 = vld [vmem:[#allocation2 + $0x8] sm:$0xf] }
 0x187   : > { %v480_v14 = vld [vmem:[#allocation2] sm:$0xff] }
 0x188   : > { %1271 = vmatprep.mubr.msk.f32.mxu0 %vm472_vm4, %v480_v14 }
 0x189   : > { %1272 = vmatmul.mubr.msk.f32.vlgmr.msra.gmra.mrb[0].mxu0 %vm472_vm4, %v481_v16 }
 0x18a   : > { %1276 = vmatprep.mubr.msk.f32.mxu0 %vm1526_vm10, %v1525_v55  ;;  %1275 = vmatpush3.msk.msra.mxu0 %vm624_vm9, %v619_v54 }
 0x25c   : > { %v1273_v20 = vpop.f32.mrb[0].mxu0 }
 0x25d   : > { %v569_v21 = vmul.f32 %v1273_v20, %v567_v18  ;;  %v557_v22 = vpop.f32.mrb[1].mxu0 }
 0x25e   : > { %v568_v23 = vmul.f32 %v566_v19, %v557_v22 }
 0x25f   : > { %v573_v24 = vsel %vm572_vm5, %v569_v21, 0.0 }
 0x260   : > { %v571_v25 = vsel %vm570_vm6, %v568_v23, 0.0 }
 0x261   : > { %v574_v26 = vadd.f32 %v573_v24, %v571_v25 }
 0x263   : > { %v575_v27 = vrot.slane %v574_v26, 4 }
 0x265   : > { %v576_v28 = vadd.f32 %v575_v27, %v574_v26 }
 0x267   : > { %v577_v29 = vrot.slane %v576_v28, 2 }
 0x269   : > { %v578_v30 = vadd.f32 %v577_v29, %v576_v28 }
 0x26b   : > { %v579_v31 = vrot.slane %v578_v30, 1 }
 0x26d   : > { %v580_v33 = vadd.f32 %v579_v31, %v578_v30 }
 0x26f   : > { %v582_v34 = vmul.f32 %v581_v32, %v580_v33 }
 0x271   : > { %v584_v35 = vsel %vm583_vm7, %v582_v34, 0.0 }
 0x272   : > { %585 = vadd.xlane.f32.xlu0 %v584_v35 }
 0x288   : > { %702 = vperm.xlu0 %1416, %v581_v32  }
 0x2ff   : > { %v586_v36 = vpop.xlane.xlu0 %585 }
 0x300   : > { %v587_v37 = vrot.slane %v586_v36, 4 }
 0x302   : > { %v588_v38 = vadd.f32 %v587_v37, %v586_v36 }
 0x304   : > { %v589_v39 = vrot.slane %v588_v38, 2 }
 0x306   : > { %v590_v40 = vadd.f32 %v589_v39, %v588_v38 }
 0x307   : > { %v703_v41 = vpop.permute.xlu0 %702 }
 0x308   : > { %v1684_v42 = vmul.f32 %v703_v41, %v580_v33  ;;  %v591_v43 = vrot.slane %v590_v40, 1 }
 0x30a   : > { %v592_v44 = vadd.f32 %v591_v43, %v590_v40  ;;  %v841_v45 = vrot.slane %v1684_v42, 4  ;;  %v707_v46 = vrot.slane %v1684_v42, 2  ;;  %v974_v23 = vrot.slane %v1684_v42, 6 }
 0x30c   : > { %1319 = vpush %v592_v44  ;;  %842 = vrot.lane.b32.xlu0 %v841_v45, %s1523_s19  ;;  %708 = vrot.lane.b32.xlu1 %v707_v46, %s1524_s20 }
 0x33d   : > { %s1320_s10 = spop %1319 }
 0x33e   : > { %v594_v47 = vstv %s1320_s10 }
 0x33f   : > { %v596_v48 = vmul.f32 0.5, %v594_v47 }
 0x341   : > { %v597_v49 = vsub.f32 %v582_v34, %v596_v48 }
 0x343   : > { %v598_v50 = vmul.f32 %v597_v49, %v597_v49 }
 0x345   : > { %v599_v51 = vsel %vm583_vm7, %v598_v50, 0.0 }
 0x346   : > { %600 = vadd.xlane.f32.xlu1 %v599_v51 }
 0x37e   : > { %v709_v52 = vpop.permute.xlu1 %708  ;;  %v843_v21 = vpop.permute.xlu0 %842 }
 0x37f   : > { %v712_v53 = vsel %vm711_vm8, %v709_v52, 0.0  ;;  %v845_v22 = vsel %vm698_vm12, %v843_v21, 0.0 }
 0x380   : > { %713 = vadd.xlane.f32.xlu1 %v712_v53 }
 0x3d3   : > { %v601_v56 = vpop.xlane.xlu1 %600 }
 0x3d4   : > { %v602_v57 = vrot.slane %v601_v56, 4 }
 0x3d6   : > { %v603_v58 = vadd.f32 %v602_v57, %v601_v56 }
 0x3d8   : > { %v604_v59 = vrot.slane %v603_v58, 2 }
 0x3da   : > { %v605_v60 = vadd.f32 %v604_v59, %v603_v58 }
 0x3dc   : > { %v606_v61 = vrot.slane %v605_v60, 1 }
 0x3de   : > { %v607_v62 = vadd.f32 %v606_v61, %v605_v60 }
 0x3e0   : > { %1321 = vpush %v607_v62 }
 0x40d   : > { %v714_v63 = vpop.xlane.xlu1 %713 }
 0x40e   : > { %v715_v0 = vrot.slane %v714_v63, 4 }
 0x410   : > { %v716_v1 = vadd.f32 %v715_v0, %v714_v63 }
 0x411   : > { %s1322_s16 = spop %1321 }
 0x412   : > { %v717_v2 = vrot.slane %v716_v1, 2  ;;  %v609_v3 = vstv %s1322_s16 }
 0x413   : > { %v610_v4 = vmul.f32 0.5, %v609_v3  ;;  %v891_v3 = vld [vmem:[%s1859_s7 + $0x5] sm:$0xff] }
 0x414   : > { %v718_v5 = vadd.f32 %v717_v2, %v716_v1 }
 0x415   : > { %v611_v6 = vadd.f32 1e-05, %v610_v4  ;;  %v892_v4 = vld [vmem:[%s1859_s7 + $0xd] sm:$0x1] }
 0x416   : > { %v719_v7 = vrot.slane %v718_v5, 1 }
 0x417   : > { %1417 = vrsqrt.f32 %v611_v6  ;;  %v1309_v6 = vpack.c.bf16 %v892_v4, %v891_v3 }
 0x418   : > { %v720_v8 = vadd.f32 %v719_v7, %v718_v5  ;;  %v1528_v5 = vmov 0.0|0.0  }
 0x419   : > { %1308 = vmatprep.subr.bf16.mxu0 %v1528_v5 }
 0x41a   : > { %1323 = vpush %v720_v8 }
 0x421   : > { %v1418_v9 = vpop.eup %1417 }
 0x422   : > { %v613_v11 = vmul.f32 %v1418_v9, %v597_v49 }
 0x424   : > { %v615_v13 = vmul.f32 %v614_v10, %v613_v11 }
 0x426   : > { %v617_v14 = vadd.f32 %v616_v12, %v615_v13 }
 0x428   : > { %v618_v15 = vmax.f32 %v617_v14, 0.0 }
 0x42a   : > { %1277 = vmatmul.mubr.msk.f32.vlgmr.msra.gmra.mrb[2].mxu0 %vm620_vm11, %v618_v15  ;;  %v880_v15 = vld [vmem:[%s1857_s5] sm:$0x3] }
 0x42b   : > { %1288 = vmatprep.mubr.msk.f32.mxu0 %vm1526_vm10, %v1525_v55  ;;  %1311 = vmatpush3.bf16.msk.msra.mxu0 %vm1310_vm15, %v1309_v6 }
 0x44b   : > { %s1324_s25 = spop %1323 }
 0x44c   : > { %v722_v16 = vstv %s1324_s25 }
 0x44d   : > { %v724_v17 = vmul.f32 0.125, %v722_v16  ;;  %v885_v16 = vld [vmem:[%s1858_s6] sm:$0x3] }
 0x44f   : > { %v1711_v18 = vsub.f32 %v1684_v42, %v724_v17  ;;  %v882_v17 = vrot.slane %v880_v15, 4 }
 0x451   : > { %v726_v19 = vmul.f32 %v1711_v18, %v1711_v18 }
 0x453   : > { %v728_v20 = vrot.slane %v726_v19, 2 }
 0x455   : > { %729 = vrot.lane.b32.xlu1 %v728_v20, %s1524_s20  ;;  %v887_v20 = vrot.slane %v885_v16, 4 }
 0x479   : > { %846 = vadd.xlane.f32.xlu1 %v845_v22 }
 0x48a   : > { %975 = vrot.lane.b32.xlu1 %v974_v23, %s1527_s26 }
 0x4c7   : > { %v730_v24 = vpop.permute.xlu1 %729 }
 0x4c8   : > { %v732_v25 = vsel %vm711_vm8, %v730_v24, 0.0 }
 0x4c9   : > { %733 = vadd.xlane.f32.xlu0 %v732_v25 }
 0x4fd   : > { %v694_v26 = vpop.f32.mrb[2].mxu0 }
 0x4fe   : > { %699 = vst.msk [vmem:[%s1658_s29] sm:$0x3] %vm698_vm12, %v694_v26  ;;  %v1278_v27 = vpop.f32.mrb[3].mxu0 }
 0x506   : > { %v847_v28 = vpop.xlane.xlu1 %846 }
 0x507   : > { %v848_v31 = vrot.slane %v847_v28, 4 }
 0x509   : > { %v849_v32 = vadd.f32 %v848_v31, %v847_v28 }
 0x50a   : > { %v976_v29 = vpop.permute.xlu1 %975 }
 0x50b   : > { %v979_v30 = vsel %vm978_vm13, %v976_v29, 0.0  ;;  %v850_v33 = vrot.slane %v849_v32, 2  ;;  %v747_v29 = vld [vmem:[%s1857_s5] sm:$0x3] }
 0x50c   : > { %980 = vadd.xlane.f32.xlu1 %v979_v30 }
 0x50d   : > { %v851_v37 = vadd.f32 %v850_v33, %v849_v32  ;;  %v749_v33 = vrot.slane %v747_v29, 6 }
 0x50f   : > { %v852_v40 = vrot.slane %v851_v37, 1 }
 0x511   : > { %v853_v44 = vadd.f32 %v852_v40, %v851_v37 }
 0x556   : > { %v734_v34 = vpop.xlane.xlu0 %733 }
 0x557   : > { %v735_v35 = vrot.slane %v734_v34, 4 }
 0x559   : > { %v736_v36 = vadd.f32 %v735_v35, %v734_v34  ;;  %v752_v34 = vld [vmem:[%s1858_s6] sm:$0x3] }
 0x55b   : > { %v737_v38 = vrot.slane %v736_v36, 2 }
 0x55d   : > { %v738_v39 = vadd.f32 %v737_v38, %v736_v36  ;;  %v754_v36 = vrot.slane %v752_v34, 6 }
 0x55f   : > { %v739_v41 = vrot.slane %v738_v39, 1 }
 0x561   : > { %v740_v43 = vadd.f32 %v739_v41, %v738_v39  ;;  %v758_v41 = vld [vmem:[%s1859_s7 + $0x1] sm:$0xf] }
 0x562   : > { %1280 = vmatpush3.msk.msra.mxu1 %vm766_vm1, %v758_v41 }
 0x563   : > { %1325 = vpush %v740_v43  ;;  %1312 = vmatprep.subr.bf16.mxu1 %v1528_v5  ;;  %v1026_v43 = vld [vmem:[%s1859_s7 + $0x16] sm:$0xff] }
 0x564   : > { %1327 = vpush %v853_v44 }
 0x594   : > { %s1723_s13 = spop %1325 }
 0x595   : > { %s1328_s14 = spop %1327  ;;  %v742_v25 = vstv %s1723_s13 }
 0x596   : > { %v855_v45 = vstv %s1328_s14  ;;  %v743_v26 = vmul.f32 0.125, %v742_v25 }
 0x597   : > { %v857_v46 = vmul.f32 0.055555556, %v855_v45 }
 0x598   : > { %v744_v27 = vadd.f32 1e-05, %v743_v26 }
 0x599   : > { %v858_v47 = vsub.f32 %v1684_v42, %v857_v46  ;;  %v981_v52 = vpop.xlane.xlu1 %980 }
 0x59a   : > { %v982_v53 = vrot.slane %v981_v52, 4 }
 0x59b   : > { %v859_v48 = vmul.f32 %v858_v47, %v858_v47 }
 0x59c   : > { %v983_v54 = vadd.f32 %v982_v53, %v981_v52 }
 0x59d   : > { %v861_v49 = vrot.slane %v859_v48, 4  ;;  %v1027_v48 = vld [vmem:[%s1859_s7 + $0x1e] sm:$0xff] }
 0x59e   : > { %v984_v56 = vrot.slane %v983_v54, 2 }
 0x59f   : > { %862 = vrot.lane.b32.xlu0 %v861_v49, %s1523_s19  ;;  %v1028_v49 = vld [vmem:[%s1859_s7 + $0x26] sm:$0xff] }
 0x5a0   : > { %v985_v60 = vadd.f32 %v984_v56, %v983_v54  ;;  %v1316_v52 = vpack.c.bf16 %v1028_v49, %v1027_v48 }
 0x5a2   : > { %v986_v63 = vrot.slane %v985_v60, 1 }
 0x5a4   : > { %v987_v2 = vadd.f32 %v986_v63, %v985_v60 }
 0x611   : > { %v863_v50 = vpop.permute.xlu0 %862 }
 0x612   : > { %v865_v51 = vsel %vm698_vm12, %v863_v50, 0.0 }
 0x613   : > { %866 = vadd.xlane.f32.xlu0 %v865_v51 }
 0x6a0   : > { %v867_v57 = vpop.xlane.xlu0 %866 }
 0x6a1   : > { %v868_v58 = vrot.slane %v867_v57, 4 }
 0x6a3   : > { %v869_v59 = vadd.f32 %v868_v58, %v867_v57  ;;  %v1029_v57 = vld [vmem:[%s1859_s7 + $0x2e] sm:$0xf] }
 0x6a5   : > { %v870_v61 = vrot.slane %v869_v59, 2 }
 0x6a7   : > { %v871_v62 = vadd.f32 %v870_v61, %v869_v59  ;;  %v1014_v61 = vld [vmem:[%s1857_s5] sm:$0x3] }
 0x6a9   : > { %v872_v0 = vrot.slane %v871_v62, 1 }
 0x6ab   : > { %v873_v1 = vadd.f32 %v872_v0, %v871_v62  ;;  %v1016_v62 = vrot.slane %v1014_v61, 2 }
 0x6ad   : > { %1329 = vpush %v873_v1 }
 0x6ae   : > { %1331 = vpush %v987_v2 }
 0x6de   : > { %s1330_s21 = spop %1329 }
 0x6df   : > { %v875_v7 = vstv %s1330_s21  ;;  %s1332_s23 = spop %1331 }
 0x6e0   : > { %v876_v8 = vmul.f32 0.055555556, %v875_v7  ;;  %v989_v9 = vstv %s1332_s23 }
 0x6e1   : > { %v991_v10 = vmul.f32 0.013888889, %v989_v9 }
 0x6e2   : > { %v877_v11 = vadd.f32 1e-05, %v876_v8 }
 0x6e3   : > { %v1737_v12 = vsub.f32 %v1684_v42, %v991_v10 }
 0x6e4   : > { %1419 = vrsqrt.f32 %v877_v11 }
 0x6e5   : > { %v993_v13 = vmul.f32 %v1737_v12, %v1737_v12  ;;  %1421 = vrsqrt.f32 %v744_v27 }
 0x6e7   : > { %v995_v14 = vrot.slane %v993_v13, 6 }
 0x6e9   : > { %996 = vrot.lane.b32.xlu0 %v995_v14, %s1527_s26 }
 0x6ee   : > { %v1420_v19 = vpop.eup %1419 }
 0x6ef   : > { %v879_v42 = vmul.f32 %v1420_v19, %v858_v47  ;;  %v1422_v28 = vpop.eup %1421 }
 0x6f0   : > { %v746_v32 = vmul.f32 %v1422_v28, %v1711_v18  ;;  %v1025_v18 = vld [vmem:[%s1859_s7 + $0xe] sm:$0xff] }
 0x6f1   : > { %v884_v21 = vmul.f32 %v882_v17, %v879_v42  ;;  %v1313_v46 = vpack.c.bf16 %v1026_v43, %v1025_v18 }
 0x6f2   : > { %v751_v35 = vmul.f32 %v749_v33, %v746_v32 }
 0x6f3   : > { %v889_v22 = vadd.f32 %v887_v20, %v884_v21 }
 0x6f4   : > { %v756_v37 = vadd.f32 %v754_v36, %v751_v35 }
 0x6f5   : > { %v890_v23 = vmax.f32 %v889_v22, 0.0 }
 0x6f6   : > { %v757_v38 = vmax.f32 %v756_v37, 0.0 }
 0x6f7   : > { %v894_v24 = vrot.slane %v890_v23, 4 }
 0x6f8   : > { %v760_v40 = vrot.slane %v757_v38, 2 }
 0x6f9   : > { %895 = vrot.lane.b32.xlu0 %v894_v24, %s1523_s19 }
 0x75b   : > { %v997_v30 = vpop.permute.xlu0 %996 }
 0x75c   : > { %v999_v31 = vsel %vm978_vm13, %v997_v30, 0.0 }
 0x75d   : > { %1000 = vadd.xlane.f32.xlu1 %v999_v31 }
 0x76b   : > { %v896_v39 = vpop.permute.xlu0 %895 }
 0x76c   : > { %1289 = vmatmul.mubr.msk.f32.vlgmr.msra.gmra.mrb[4].mxu0 %vm897_vm0, %v896_v39 }
 0x76e   : > { %761 = vrot.lane.b32.xlu1 %v760_v40, %s1524_s20 }
 0x7ea   : > { %v1001_v44 = vpop.xlane.xlu1 %1000 }
 0x7eb   : > { %v1002_v45 = vrot.slane %v1001_v44, 4 }
 0x7ed   : > { %v1003_v47 = vadd.f32 %v1002_v45, %v1001_v44 }
 0x7ee   : > { %v762_v50 = vpop.permute.xlu1 %761 }
 0x7ef   : > { %v1004_v51 = vrot.slane %v1003_v47, 2  ;;  %1282 = vmatmul.mubr.msk.f32.vlgmr.msra.gmra.mrb[0].mxu1 %vm763_vm2, %v762_v50 }
 0x7f0   : > { %1314 = vmatpush3.bf16.msra.mxu1 %v1313_v46  ;;  %1301 = vmatprep.mubr.msk.f32.mxu1 %vm1526_vm10, %v1525_v55 }
 0x7f1   : > { %v1005_v53 = vadd.f32 %v1004_v51, %v1003_v47  ;;  %1315 = vmatprep.subr.bf16.mxu1 %v1528_v5 }
 0x7f3   : > { %v1006_v54 = vrot.slane %v1005_v53, 1 }
 0x7f4   : > { %1317 = vmatpush3.bf16.msra.mxu1 %v1316_v52 }
 0x7f5   : > { %v1007_v56 = vadd.f32 %v1006_v54, %v1005_v53  ;;  %1299 = vmatprep.subr.mxu1 %v1525_v55  ;;  %v1019_v55 = vld [vmem:[%s1858_s6] sm:$0x3] }
 0x7f6   : > { %v1021_v1 = vrot.slane %v1019_v55, 2 }
 0x7f7   : > { %1333 = vpush %v1007_v56 }
 0x7f8   : > { %1300 = vmatpush3.msk.msra.mxu1 %vm766_vm1, %v1029_v57 }
 0x828   : > { %s1334_s16 = spop %1333 }
 0x829   : > { %v1009_v58 = vstv %s1334_s16 }
 0x82a   : > { %v1010_v59 = vmul.f32 0.013888889, %v1009_v58 }
 0x82c   : > { %v1011_v60 = vadd.f32 1e-05, %v1010_v59 }
 0x82e   : > { %1423 = vrsqrt.f32 %v1011_v60 }
 0x838   : > { %v1424_v63 = vpop.eup %1423 }
 0x839   : > { %v1013_v0 = vmul.f32 %v1424_v63, %v1737_v12 }
 0x83b   : > { %v1018_v2 = vmul.f32 %v1016_v62, %v1013_v0 }
 0x83d   : > { %v1023_v3 = vadd.f32 %v1021_v1, %v1018_v2 }
 0x83f   : > { %v969_v4 = vpop.f32.mrb[4].mxu0  ;;  %v1024_v5 = vmax.f32 %v1023_v3, 0.0 }
 0x840   : > { %973 = vst.msk [vmem:[%s1658_s29 + $0x4] sm:$0x3] %vm698_vm12, %v969_v4  ;;  %v1290_v6 = vpop.f32.mrb[5].mxu0 }
 0x841   : > { %v1031_v7 = vrot.slane %v1024_v5, 6 }
 0x843   : > { %1032 = vrot.lane.b32.xlu0 %v1031_v7, %s1527_s26 }
 0x8b5   : > { %v1033_v8 = vpop.permute.xlu0 %1032 }
 0x8b6   : > { %1302 = vmatmul.mubr.msk.f32.vlgmr.msra.gmra.mrb[2].mxu1 %vm1034_vm3, %v1033_v8 }
 0x8c2   : > { %v836_v9 = vpop.f32.mrb[0].mxu1 }
 0x8c3   : > { %840 = vst.msk [vmem:[%s1658_s29 + $0x2] sm:$0x3] %vm698_vm12, %v836_v9  ;;  %v1283_v10 = vpop.f32.mrb[1].mxu1 }
 0x989   : > { %v1106_v11 = vpop.f32.mrb[2].mxu1 }
 0x98a   : > { %1110 = vst.msk [vmem:[%s1658_s29 + $0x6] sm:$0x3] %vm698_vm12, %v1106_v11  ;;  %v1303_v12 = vpop.f32.mrb[3].mxu1 }
 0x98b PF: > { %s1236_s30 = sshll.u32 %s1507_s9, 7  ;;  %s1125_s14 = sshll.u32 %s1658_s29, 4  ;;  %s1126_s14 = int_to_ptr.vmem [resolvable:$true] %s1125_s14 }
 0x98c   : > { %s1802_s26 = scalar_lea.hbm %s1860_s8, %s1236_s30  ;;  %s1112_s20 = scalar_lea.sflag [#allocation4], %s329_s22 }
 0x98d   : > { %s1425_s10 = scalar_lea.vmem %s1126_s14, 128  ;;  %s1530_s11 = smov [#allocation3]  }
 0x98e   : > { %p1426_p2 = scmp.ne.s32.totalorder %s1126_s14, %s1425_s10  ;;  %s1429_s15 = sshll.u32 %s1530_s11, 4  ;;  %s1430_s15 = int_to_ptr.vmem [resolvable:$false] %s1429_s15 }
 0x98f   : > { %s1431_s16 = scalar_lea.vmem %s1430_s15, 256  ;;  %p1432_p6 = scmp.lt.s32.totalorder %s1126_s14, %s1430_s15 }
 0x990   : > { %p1427_p4 = pnand %p1426_p2, %p1625_p3  ;;  %p1433_p7 = scmp.lt.s32.totalorder %s1431_s16, %s1425_s10 }
 0x992   : > { %p1428_p5 = pneg %p1427_p4  ;;  %p1434_p8 = por %p1433_p7, %p1432_p6 }
 0x994   : > { %p1435_p10 = pnand %p1434_p8, %p1428_p5 }
 0x996   : > { %1438 = shalt.err (!%p1435_p10)
}
 0x997   : > { %s1439_s29 = scalar_lea.hbm %s1802_s26, 128  ;;  %s1443_s19 = scalar_lea.hbm %s1860_s8, 256 }
 0x998   : > { %p1440_p11 = scmp.ne.s32.totalorder %s1802_s26, %s1439_s29  ;;  %p1444_p0 = scmp.lt.u32.totalorder %s1802_s26, %s1860_s8 }
 0x999   : > { %p1445_p1 = scmp.lt.u32.totalorder %s1443_s19, %s1439_s29  ;;  %p1447_p4 = scmp.lt.u32.totalorder %s1439_s29, %s1802_s26 }
 0x99a   : > { %p1441_p12 = pnand %p1440_p11, %p1625_p3 }
 0x99b   : > { %p1446_p2 = por %p1445_p1, %p1444_p0 }
 0x99c   : > { %p1442_p13 = pneg %p1441_p12 }
 0x99d   : > { %p1448_p5 = por %p1447_p4, %p1446_p2 }
 0x99f   : > { %p1449_p6 = pnand %p1448_p5, %p1442_p13 }
 0x9a1   : > { %1452 = shalt.err (!%p1449_p6)
}
 0x9a2   : > { %1335 = dma.vmem_to_hbm [thread:$0]  (%p1625_p3), %s1126_s14, 128, %s1802_s26, %s1112_s20  }
 0x9a3 PF: > { %p1341_p7 = scmp.ge.s32.totalorder %s1519_s12, 2  ;;  %s1137_s23 = sand.u32 1, %s1491_s27  }
 0x9a4   : > { %s1138_s30 = scalar_lea.sflag [#allocation4], %s1137_s23 }
 0x9a5   : > { %p1338_p8 = pnand %p1341_p7, %p1635_p9 }
 0x9a7   : > { %1486 = dma.done.wait (!%p1338_p8), %s1138_s30, 128  }
 0x9a8   : > { %1488 = vsyncadd (!%p1338_p8), %s1138_s30, 4294967168  ;;  %s21_s12 = sadd.s32 1, %s1519_s12   ;;  %s1873_s24 = sld [smem:[#allocation6_spill]] }
 0x9a9   : > { %p18_p10 = scmp.ge.s32.totalorder %s21_s12, 8   ;;  %s1874_s29 = sld [smem:[#allocation11_spill]] }
 0x9aa   : > { %s1875_s30 = sld [smem:[#allocation7_spill]]  ;;  %s1876_s9 = sld [smem:[#allocation8_spill]] }
 0x9ab   : > { %s1877_s10 = sld [smem:[#allocation9_spill]]  ;;  %s1878_s11 = sld [smem:[#allocation10_spill]] }
 0x9ac   : > { %s1879_s27 = smov %s1495_s28  ;;  %20 = sbr.rel (!%p18_p10) target bundleno = 5 (0x5), region = 98 }
 0x9ae   : > { %s1880_s28 = smov %s1873_s24 }
 0x9b3   :  { %1143 = vsyncpa [#allocation4], 1 }
 0x9b4   :  { %1145 = vsyncpa [#allocation4 + $0x1], 1 }

</bundles_post_ra>
